<compile_context>
chip_gen: v6e
topology: v6e:2x2x1
jax: 0.10.0
libtpu: 0.0.40
codegen_flags: <defaults>
</compile_context>

<pallas_src>
import jax
import jax.numpy as jnp
from jax import lax
from jax.experimental import pallas as pl
from jax.experimental.pallas import tpu as pltpu

KERNEL_SIZES = (3, 7, 15)
DILATIONS = (1, 2, 4)
S4_STATE = 16       # scaled down from 64 for the small synthetic config
LANES = 128         # TPU lane width -- feature dims padded to this


def _pad_to(n, m=LANES):
    return ((n + m - 1) // m) * m


# ------------------------------ structure branch ------------------------------
# Per perf review: a standalone pallas_call for four (B,16)-row matmuls is pure
# launch + DMA overhead, so the structure head runs as plain XLA.
# The MultiheadAttention sees a length-1 sequence: softmax over a single key is
# identically 1, so attn(x, x, x) == out_proj(v_proj(x)) exactly (this shortcut
# silently breaks if the structure branch ever sees seq len > 1).
def structure_forward(p, text):
    h = jax.nn.relu(text @ p["w1"] + p["b1"])
    v = h @ p["wv"] + p["bv"]
    a = v @ p["wo"] + p["bo"]
    return jax.nn.softmax(a @ p["ws"] + p["bs"], axis=-1)


# ------------------------------ StripedHyena branch ----------------------------
def conv_tap_offsets(L):
    """Static tap offsets (relative to the output position) for the three convs.

    Offsets with |o| >= L only ever read zero padding and are dropped."""
    per_conv = []
    offsets = set()
    for k, d in zip(KERNEL_SIZES, DILATIONS):
        pad = (k - 1) * d // 2          # torch 'same' padding (k odd -> symmetric)
        taps = {}
        for j in range(k):
            o = j * d - pad
            if abs(o) <= L - 1:
                taps[o] = j
                offsets.add(o)
        per_conv.append(taps)
    return tuple(sorted(offsets)), per_conv


def derive_branch(p, offsets, per_conv_taps, Hp, out_pad):
    """Glue (runs once in XLA): pack the three conv weights for ALL tap offsets
    into one (n_off*D, Hp) matrix, fuse gate+residual weights into (D, 2*Hp),
    lane-pad every H-wide tensor to Hp, and lane-pad the output Linear."""
    D = p["w_g"].shape[0]
    H = p["w_g"].shape[1]                                       # 3*D (real)
    padH = ((0, 0), (0, Hp - H))

    blocks = []
    for o in offsets:
        cols = []
        for i, taps in enumerate(per_conv_taps):
            if o in taps:
                cols.append(p[f"w_c{i}"][taps[o]])              # (D, D)
            else:
                cols.append(jnp.zeros((D, D), jnp.float32))
        blocks.append(jnp.concatenate(cols, axis=1))            # (D, H)
    wpk = jnp.concatenate(blocks, axis=0)                       # (n_off*D, H)
    wpk = jnp.pad(wpk, ((0, 0), (0, Hp - H))).astype(jnp.bfloat16)
    bconv = jnp.pad(jnp.concatenate([p["b_c0"], p["b_c1"], p["b_c2"]], axis=1),
                    padH)                                       # (1, Hp)

    # gate + residual packed into one weight (same LHS in the kernel)
    wgr = jnp.concatenate([jnp.pad(p["w_g"], padH),
                           jnp.pad(p["w_r"], padH)], axis=1).astype(jnp.bfloat16)
    bgr = jnp.concatenate([jnp.pad(p["b_g"], padH),
                           jnp.pad(p["b_r"], padH)], axis=1)    # (1, 2*Hp)

    # simplified S4 (diagonal SSM) params laid out (state, Hp): lanes = features
    s4_a = jnp.pad(p["s4_A"].T, padH)                           # (N, Hp)
    s4_b = jnp.pad(p["s4_B"].T, padH)
    s4_c = jnp.pad(p["s4_C"].T, padH)
    s4_d = jnp.pad(p["s4_D"], padH)                             # (1, Hp)

    gamma = jnp.pad(p["gamma"], padH)
    beta = jnp.pad(p["beta"], padH)

    dout = p["w_out"].shape[1]
    wout = jnp.pad(p["w_out"],
                   ((0, Hp - H), (0, out_pad - dout))).astype(jnp.bfloat16)
    bout = jnp.pad(p["b_out"], ((0, 0), (0, out_pad - dout)))
    return (wpk, bconv, wgr, bgr, s4_a, s4_b, s4_c, s4_d,
            gamma, beta, wout, bout)


def make_hyena_kernel(L, Tr, Td, offsets, P, H, Hp, n_state):
    D = Tr + Td

    def kernel(x_ref, text_ref, wpk_ref, bconv_ref, wgr_ref, bgr_ref,
               s4a_ref, s4b_ref, s4c_ref, s4d_ref, gamma_ref, beta_ref,
               wout_ref, bout_ref, out_ref):
        x = x_ref[...]                                          # (L, Tr) f32
        # combined [track, broadcast(text)] features built in VMEM -- no
        # pre-concatenated (B, L, D) activation materialized in HBM.
        xc = jnp.concatenate(
            [x, jnp.broadcast_to(text_ref[...], (L, Td))], axis=-1)   # (L, D)

        # --- three dilated 'same' Conv1d's fused into ONE deep-K matmul -----
        # shifted windows gathered along the feature axis -> (L, n_off*D),
        # multiplied by the packed (n_off*D, Hp) weight: one MXU push instead
        # of 9 shallow K=D matmuls + 8 VPU accumulate-adds.
        if P > 0:
            zp = jnp.zeros((P, D), jnp.float32)
            xpad = jnp.concatenate([zp, xc, zp], axis=0)        # (L+2P, D)
        else:
            xpad = xc
        xsh = jnp.concatenate([xpad[P + o:P + o + L, :] for o in offsets],
                              axis=-1)                          # (L, n_off*D)
        acc = (jnp.dot(xsh.astype(jnp.bfloat16), wpk_ref[...],
                       preferred_element_type=jnp.float32) + bconv_ref[...])

        # --- gate + residual 1x1 convs: one (D, 2*Hp) matmul, slice lanes ---
        gr = (jnp.dot(xc.astype(jnp.bfloat16), wgr_ref[...],
                      preferred_element_type=jnp.float32) + bgr_ref[...])
        gate = jax.nn.sigmoid(gr[:, :Hp])
        resid = gr[:, Hp:]
        gated = acc * gate                                      # (L, Hp) f32

        # --- simplified S4: causal diagonal-SSM recurrence (no O(L^2)) ------
        # TODO(synk): the S4 class was not provided in the reference; this is a
        # real diagonal SSM  s_t = A*s_{t-1} + B*u_t,  y_t = sum_n C*s_t + D*u_t.
        # At production L replace the unrolled loop with a chunked
        # lax.fori_loop scan that carries the state across L-tiles.
        A = s4a_ref[...]
        Bp = s4b_ref[...]
        C = s4c_ref[...]
        Dp = s4d_ref[...]
        s = jnp.zeros((n_state, Hp), jnp.float32)
        ys = []
        for t in range(L):                                      # static, small L
            u = gated[t:t + 1, :]                               # (1, Hp)
            s = A * s + Bp * u
            ys.append(jnp.sum(C * s, axis=0, keepdims=True) + Dp * u)
        o_ = jnp.concatenate(ys, axis=0) + resid                # (L, Hp)

        # --- LayerNorm over the REAL H features (cols >= H are exact zeros) --
        col = lax.broadcasted_iota(jnp.int32, o_.shape, 1)
        mu = jnp.sum(o_, axis=-1, keepdims=True) * (1.0 / H)    # pad cols are 0
        dev = jnp.where(col < H, o_ - mu, 0.0)
        var = jnp.sum(dev * dev, axis=-1, keepdims=True) * (1.0 / H)
        o_n = dev * lax.rsqrt(var + 1e-5) * gamma_ref[...] + beta_ref[...]

        # output head: K = Hp (128-aligned); lane-dense bf16 store (halves
        # HBM writeback); wrapper slices the real columns and casts.
        out_ref[...] = (jnp.dot(o_n.astype(jnp.bfloat16), wout_ref[...],
                                preferred_element_type=jnp.float32)
                        + bout_ref[...]).astype(out_ref.dtype)

    return kernel


def hyena_branches_forward(branch_params, xs, text):
    """Run S shape-identical StripedHyena branches in ONE pallas_call.

    grid=(S, B): branch axis "parallel" (v7x puts one branch per TensorCore),
    batch axis "parallel" too, so each core has multiple grid steps and the
    weight/activation DMA pipelines behind MXU work."""
    S = len(xs)
    B, L, Tr = xs[0].shape
    Td = text.shape[-1]
    D = Tr + Td
    H = 3 * D
    Hp = _pad_to(H)
    dout = branch_params[0]["w_out"].shape[1]
    out_pad = _pad_to(dout)

    offsets, per_conv_taps = conv_tap_offsets(L)
    P = max(abs(o) for o in offsets)

    x_stacked = jnp.stack(xs, axis=0)                           # (S, B, L, Tr)
    text3 = text[:, None, :]                                    # (B, 1, Td)
    derived = [derive_branch(p, offsets, per_conv_taps, Hp, out_pad)
               for p in branch_params]
    stacked = [jnp.stack(ws, axis=0) for ws in zip(*derived)]   # leading dim S

    def branch_spec(arr):
        nd = arr.ndim
        return pl.BlockSpec((None,) + arr.shape[1:],
                            lambda s, b, _nd=nd: (s,) + (0,) * (_nd - 1))

    in_specs = [pl.BlockSpec((None, None, L, Tr), lambda s, b: (s, b, 0, 0)),
                pl.BlockSpec((None, 1, Td), lambda s, b: (b, 0, 0))]
    in_specs += [branch_spec(w) for w in stacked]

    # NOTE(v7x): at production dims single-buffer the per-branch weight operands
    # (pipeline_mode=pl.Buffered(1)) and keep vmem_limit_bytes <= ~48 MiB
    # (64 MiB physical per TC).  NOTE(v6e): raise toward ~96-100 MiB and take
    # the largest L/row tile that fits (128 MiB physical).
    out = pl.pallas_call(
        make_hyena_kernel(L, Tr, Td, offsets, P, H, Hp, S4_STATE),
        out_shape=jax.ShapeDtypeStruct((S, B, L, out_pad), jnp.bfloat16),
        grid=(S, B),
        in_specs=in_specs,
        out_specs=pl.BlockSpec((None, None, L, out_pad),
                               lambda s, b: (s, b, 0, 0)),
        compiler_params=pltpu.CompilerParams(
            dimension_semantics=("parallel", "parallel"),
            vmem_limit_bytes=48 * 1024 * 1024),
    )(x_stacked, text3, *stacked)

    return out[..., :dout].astype(jnp.float32)                  # (S, B, L, dout)


# ---------------------------------- parameters ---------------------------------
def init_params(key, text_dim, track_dim):
    D = track_dim + text_dim
    H = 3 * D
    keys = iter(jax.random.split(key, 64))

    def nrm(shape, s=0.05):
        return s * jax.random.normal(next(keys), shape, jnp.float32)

    structure = dict(
        w1=nrm((text_dim, 128)), b1=nrm((1, 128)),
        wv=nrm((128, 128)), bv=nrm((1, 128)),
        wo=nrm((128, 128)), bo=nrm((1, 128)),
        ws=nrm((128, 7)), bs=nrm((1, 7)),
    )

    def hyena_params():
        p = {}
        for i, k in enumerate(KERNEL_SIZES):
            p[f"w_c{i}"] = nrm((k, D, D))        # (tap, c_in, c_out)
            p[f"b_c{i}"] = nrm((1, D))
        p["w_g"] = nrm((D, H)); p["b_g"] = nrm((1, H))
        p["w_r"] = nrm((D, H)); p["b_r"] = nrm((1, H))
        p["s4_A"] = jax.random.uniform(next(keys), (H, S4_STATE), jnp.float32, 0.1, 0.9)
        p["s4_B"] = nrm((H, S4_STATE), 0.2)
        p["s4_C"] = nrm((H, S4_STATE), 0.2)
        p["s4_D"] = nrm((1, H), 0.2)
        p["gamma"] = jnp.ones((1, H), jnp.float32)
        p["beta"] = jnp.zeros((1, H), jnp.float32)
        # NOTE: the reference declares phrase_output/encodec_output as
        # Linear(D, track_dim), but the hyena layer output has 3*D features
        # (shape mismatch in the original); use Linear(3*D, track_dim).
        p["w_out"] = nrm((H, track_dim))
        p["b_out"] = nrm((1, track_dim))
        return p

    return dict(structure=structure, phrase=hyena_params(), encodec=hyena_params())


# ----------------------------------- forward -----------------------------------
def hierarchical_music_generator(params, text, phrase, encodec):
    structure_out = structure_forward(params["structure"], text)

    if phrase.shape == encodec.shape:
        outs = hyena_branches_forward(
            [params["phrase"], params["encodec"]], [phrase, encodec], text)
        phrase_out, encodec_out = outs[0], outs[1]
    else:  # different sequence lengths: fall back to one call per branch
        phrase_out = hyena_branches_forward([params["phrase"]], [phrase], text)[0]
        encodec_out = hyena_branches_forward([params["encodec"]], [encodec], text)[0]

    return structure_out, phrase_out, encodec_out


if __name__ == "__main__":
    B, num_tracks, encodec_dim, text_dim = 2, 4, 4, 16
    Lp, Le = 8, 8
    track_dim = num_tracks * encodec_dim          # 16
    # combined hyena model dim D = track_dim + text_dim = 32, hyena width 3*D = 96
    # (lane-padded to 128 inside the kernel)

    root = jax.random.PRNGKey(0)
    k_params, k_text, k_phrase, k_enc = jax.random.split(root, 4)
    params = init_params(k_params, text_dim, track_dim)

    text = jax.random.normal(k_text, (B, text_dim), jnp.float32)
    phrase = jax.random.normal(k_phrase, (B, Lp, track_dim), jnp.float32)
    encodec = jax.random.normal(k_enc, (B, Le, track_dim), jnp.float32)

    s_out, p_out, e_out = jax.jit(hierarchical_music_generator)(
        params, text, phrase, encodec)
    jax.block_until_ready((s_out, p_out, e_out))

    assert s_out.shape == (B, 7)
    assert p_out.shape == (B, Lp, track_dim)
    assert e_out.shape == (B, Le, track_dim)
    assert bool(jnp.all(jnp.isfinite(s_out)))
    assert bool(jnp.all(jnp.isfinite(p_out)))
    assert bool(jnp.all(jnp.isfinite(e_out)))
    # softmax rows sum to 1
    assert bool(jnp.allclose(jnp.sum(s_out, axis=-1), 1.0, atol=1e-5))
    print("KERNEL_OK")
</pallas_src>

<mosaic_0001>
module attributes {stable_mosaic.version = 11 : i64} {
  func.func @kernel(%arg0: i32, %arg1: i32, %arg2: memref<1x1x8x16xf32, #tpu.memory_space<vmem>>, %arg3: memref<1x1x16xf32, #tpu.memory_space<vmem>>, %arg4: memref<1x288x128xbf16, #tpu.memory_space<vmem>>, %arg5: memref<1x1x128xf32, #tpu.memory_space<vmem>>, %arg6: memref<1x32x256xbf16, #tpu.memory_space<vmem>>, %arg7: memref<1x1x256xf32, #tpu.memory_space<vmem>>, %arg8: memref<1x16x128xf32, #tpu.memory_space<vmem>>, %arg9: memref<1x16x128xf32, #tpu.memory_space<vmem>>, %arg10: memref<1x16x128xf32, #tpu.memory_space<vmem>>, %arg11: memref<1x1x128xf32, #tpu.memory_space<vmem>>, %arg12: memref<1x1x128xf32, #tpu.memory_space<vmem>>, %arg13: memref<1x1x128xf32, #tpu.memory_space<vmem>>, %arg14: memref<1x128x128xbf16, #tpu.memory_space<vmem>>, %arg15: memref<1x1x128xf32, #tpu.memory_space<vmem>>, %arg16: memref<1x1x8x128xbf16, #tpu.memory_space<vmem>>) attributes {dimension_semantics = [#tpu.dimension_semantics<parallel>, #tpu.dimension_semantics<parallel>], iteration_bounds = array<i64: 2, 2>, scalar_prefetch = 0 : i64, scratch_operands = 0 : i64, tpu.core_type = #tpu.core_type<tc>, window_params = [{transform_indices = @transform_0, window_bounds = array<i64: 1, 1, 8, 16>}, {transform_indices = @transform_1, window_bounds = array<i64: 1, 1, 16>}, {transform_indices = @transform_2, window_bounds = array<i64: 1, 288, 128>}, {transform_indices = @transform_3, window_bounds = array<i64: 1, 1, 128>}, {transform_indices = @transform_4, window_bounds = array<i64: 1, 32, 256>}, {transform_indices = @transform_5, window_bounds = array<i64: 1, 1, 256>}, {transform_indices = @transform_6, window_bounds = array<i64: 1, 16, 128>}, {transform_indices = @transform_7, window_bounds = array<i64: 1, 16, 128>}, {transform_indices = @transform_8, window_bounds = array<i64: 1, 16, 128>}, {transform_indices = @transform_9, window_bounds = array<i64: 1, 1, 128>}, {transform_indices = @transform_10, window_bounds = array<i64: 1, 1, 128>}, {transform_indices = @transform_11, window_bounds = array<i64: 1, 1, 128>}, {transform_indices = @transform_12, window_bounds = array<i64: 1, 128, 128>}, {transform_indices = @transform_13, window_bounds = array<i64: 1, 1, 128>}, {transform_indices = @transform_14, window_bounds = array<i64: 1, 1, 8, 128>}]} {
    %c0 = arith.constant 0 : index
    %c0_0 = arith.constant 0 : index
    %c0_1 = arith.constant 0 : index
    %c0_2 = arith.constant 0 : index
    %0 = vector.load %arg2[%c0, %c0_0, %c0_1, %c0_2] : memref<1x1x8x16xf32, #tpu.memory_space<vmem>>, vector<1x1x8x16xf32>
    %1 = vector.shape_cast %0 : vector<1x1x8x16xf32> to vector<8x16xf32>
    %c0_3 = arith.constant 0 : index
    %c0_4 = arith.constant 0 : index
    %c0_5 = arith.constant 0 : index
    %2 = vector.load %arg3[%c0_3, %c0_4, %c0_5] : memref<1x1x16xf32, #tpu.memory_space<vmem>>, vector<1x1x16xf32>
    %3 = vector.shape_cast %2 : vector<1x1x16xf32> to vector<1x16xf32>
    %4 = vector.shape_cast %3 : vector<1x16xf32> to vector<1x16xf32>
    %5 = vector.broadcast %4 : vector<1x16xf32> to vector<8x16xf32>
    %6 = tpu.concatenate %1, %5 in 1 : vector<8x16xf32>, vector<8x16xf32> -> vector<8x32xf32>
    %cst = arith.constant 0.000000e+00 : f32
    %7 = vector.broadcast %cst : f32 to vector<6x32xf32>
    %8 = tpu.concatenate %7, %6, %7 in 0 : vector<6x32xf32>, vector<8x32xf32>, vector<6x32xf32> -> vector<20x32xf32>
    %9 = vector.extract_strided_slice %8 {offsets = [0, 0], sizes = [8, 32], strides = [1, 1]} : vector<20x32xf32> to vector<8x32xf32>
    %10 = vector.extract_strided_slice %8 {offsets = [2, 0], sizes = [8, 32], strides = [1, 1]} : vector<20x32xf32> to vector<8x32xf32>
    %11 = vector.extract_strided_slice %8 {offsets = [4, 0], sizes = [8, 32], strides = [1, 1]} : vector<20x32xf32> to vector<8x32xf32>
    %12 = vector.extract_strided_slice %8 {offsets = [5, 0], sizes = [8, 32], strides = [1, 1]} : vector<20x32xf32> to vector<8x32xf32>
    %13 = vector.extract_strided_slice %8 {offsets = [6, 0], sizes = [8, 32], strides = [1, 1]} : vector<20x32xf32> to vector<8x32xf32>
    %14 = vector.extract_strided_slice %8 {offsets = [7, 0], sizes = [8, 32], strides = [1, 1]} : vector<20x32xf32> to vector<8x32xf32>
    %15 = vector.extract_strided_slice %8 {offsets = [8, 0], sizes = [8, 32], strides = [1, 1]} : vector<20x32xf32> to vector<8x32xf32>
    %16 = vector.extract_strided_slice %8 {offsets = [10, 0], sizes = [8, 32], strides = [1, 1]} : vector<20x32xf32> to vector<8x32xf32>
    %17 = vector.extract_strided_slice %8 {offsets = [12, 0], sizes = [8, 32], strides = [1, 1]} : vector<20x32xf32> to vector<8x32xf32>
    %18 = tpu.concatenate %9, %10, %11, %12, %13, %14, %15, %16, %17 in 1 : vector<8x32xf32>, vector<8x32xf32>, vector<8x32xf32>, vector<8x32xf32>, vector<8x32xf32>, vector<8x32xf32>, vector<8x32xf32>, vector<8x32xf32>, vector<8x32xf32> -> vector<8x288xf32>
    %19 = arith.truncf %18 : vector<8x288xf32> to vector<8x288xbf16>
    %c0_6 = arith.constant 0 : index
    %c0_7 = arith.constant 0 : index
    %c0_8 = arith.constant 0 : index
    %20 = vector.load %arg4[%c0_6, %c0_7, %c0_8] : memref<1x288x128xbf16, #tpu.memory_space<vmem>>, vector<1x288x128xbf16>
    %21 = vector.shape_cast %20 : vector<1x288x128xbf16> to vector<288x128xbf16>
    %cst_9 = arith.constant dense<0.000000e+00> : vector<8x128xf32>
    %22 = tpu.matmul %19, %21, %cst_9 {dimension_numbers = #tpu.dot_dimension_numbers<[1], [0], [0], [1], [0, 0, 1, 1], [], []>} : vector<8x288xbf16>, vector<288x128xbf16>, vector<8x128xf32> -> vector<8x128xf32>
    %c0_10 = arith.constant 0 : index
    %c0_11 = arith.constant 0 : index
    %c0_12 = arith.constant 0 : index
    %23 = vector.load %arg5[%c0_10, %c0_11, %c0_12] : memref<1x1x128xf32, #tpu.memory_space<vmem>>, vector<1x1x128xf32>
    %24 = vector.shape_cast %23 : vector<1x1x128xf32> to vector<1x128xf32>
    %25 = vector.broadcast %24 : vector<1x128xf32> to vector<8x128xf32>
    %26 = arith.addf %22, %25 : vector<8x128xf32>
    %27 = arith.truncf %6 : vector<8x32xf32> to vector<8x32xbf16>
    %c0_13 = arith.constant 0 : index
    %c0_14 = arith.constant 0 : index
    %c0_15 = arith.constant 0 : index
    %28 = vector.load %arg6[%c0_13, %c0_14, %c0_15] : memref<1x32x256xbf16, #tpu.memory_space<vmem>>, vector<1x32x256xbf16>
    %29 = vector.shape_cast %28 : vector<1x32x256xbf16> to vector<32x256xbf16>
    %cst_16 = arith.constant dense<0.000000e+00> : vector<8x256xf32>
    %30 = tpu.matmul %27, %29, %cst_16 {dimension_numbers = #tpu.dot_dimension_numbers<[1], [0], [0], [1], [0, 0, 1, 1], [], []>} : vector<8x32xbf16>, vector<32x256xbf16>, vector<8x256xf32> -> vector<8x256xf32>
    %c0_17 = arith.constant 0 : index
    %c0_18 = arith.constant 0 : index
    %c0_19 = arith.constant 0 : index
    %31 = vector.load %arg7[%c0_17, %c0_18, %c0_19] : memref<1x1x256xf32, #tpu.memory_space<vmem>>, vector<1x1x256xf32>
    %32 = vector.shape_cast %31 : vector<1x1x256xf32> to vector<1x256xf32>
    %33 = vector.broadcast %32 : vector<1x256xf32> to vector<8x256xf32>
    %34 = arith.addf %30, %33 : vector<8x256xf32>
    %35 = vector.extract_strided_slice %34 {offsets = [0, 0], sizes = [8, 128], strides = [1, 1]} : vector<8x256xf32> to vector<8x128xf32>
    %36 = arith.negf %35 : vector<8x128xf32>
    %37 = math.exp %36 : vector<8x128xf32>
    %cst_20 = arith.constant 1.000000e+00 : f32
    %38 = vector.broadcast %cst_20 : f32 to vector<8x128xf32>
    %39 = arith.addf %38, %37 : vector<8x128xf32>
    %40 = arith.divf %38, %39 : vector<8x128xf32>
    %41 = vector.extract_strided_slice %34 {offsets = [0, 128], sizes = [8, 128], strides = [1, 1]} : vector<8x256xf32> to vector<8x128xf32>
    %42 = arith.mulf %26, %40 : vector<8x128xf32>
    %c0_21 = arith.constant 0 : index
    %c0_22 = arith.constant 0 : index
    %c0_23 = arith.constant 0 : index
    %43 = vector.load %arg8[%c0_21, %c0_22, %c0_23] : memref<1x16x128xf32, #tpu.memory_space<vmem>>, vector<1x16x128xf32>
    %44 = vector.shape_cast %43 : vector<1x16x128xf32> to vector<16x128xf32>
    %c0_24 = arith.constant 0 : index
    %c0_25 = arith.constant 0 : index
    %c0_26 = arith.constant 0 : index
    %45 = vector.load %arg9[%c0_24, %c0_25, %c0_26] : memref<1x16x128xf32, #tpu.memory_space<vmem>>, vector<1x16x128xf32>
    %46 = vector.shape_cast %45 : vector<1x16x128xf32> to vector<16x128xf32>
    %c0_27 = arith.constant 0 : index
    %c0_28 = arith.constant 0 : index
    %c0_29 = arith.constant 0 : index
    %47 = vector.load %arg10[%c0_27, %c0_28, %c0_29] : memref<1x16x128xf32, #tpu.memory_space<vmem>>, vector<1x16x128xf32>
    %48 = vector.shape_cast %47 : vector<1x16x128xf32> to vector<16x128xf32>
    %c0_30 = arith.constant 0 : index
    %c0_31 = arith.constant 0 : index
    %c0_32 = arith.constant 0 : index
    %49 = vector.load %arg11[%c0_30, %c0_31, %c0_32] : memref<1x1x128xf32, #tpu.memory_space<vmem>>, vector<1x1x128xf32>
    %50 = vector.shape_cast %49 : vector<1x1x128xf32> to vector<1x128xf32>
    %cst_33 = arith.constant 0.000000e+00 : f32
    %51 = vector.broadcast %cst_33 : f32 to vector<16x128xf32>
    %52 = vector.extract_strided_slice %42 {offsets = [0, 0], sizes = [1, 128], strides = [1, 1]} : vector<8x128xf32> to vector<1x128xf32>
    %53 = arith.mulf %44, %51 : vector<16x128xf32>
    %54 = vector.broadcast %52 : vector<1x128xf32> to vector<16x128xf32>
    %55 = arith.mulf %46, %54 : vector<16x128xf32>
    %56 = arith.addf %53, %55 : vector<16x128xf32>
    %57 = arith.mulf %48, %56 : vector<16x128xf32>
    %cst_34 = arith.constant dense<0.000000e+00> : vector<128xf32>
    %58 = vector.multi_reduction <add>, %57, %cst_34 [0] : vector<16x128xf32> to vector<128xf32>
    %59 = vector.shape_cast %58 : vector<128xf32> to vector<1x128xf32>
    %60 = arith.mulf %50, %52 : vector<1x128xf32>
    %61 = arith.addf %59, %60 : vector<1x128xf32>
    %62 = vector.extract_strided_slice %42 {offsets = [1, 0], sizes = [1, 128], strides = [1, 1]} : vector<8x128xf32> to vector<1x128xf32>
    %63 = arith.mulf %44, %56 : vector<16x128xf32>
    %64 = vector.broadcast %62 : vector<1x128xf32> to vector<16x128xf32>
    %65 = arith.mulf %46, %64 : vector<16x128xf32>
    %66 = arith.addf %63, %65 : vector<16x128xf32>
    %67 = arith.mulf %48, %66 : vector<16x128xf32>
    %cst_35 = arith.constant dense<0.000000e+00> : vector<128xf32>
    %68 = vector.multi_reduction <add>, %67, %cst_35 [0] : vector<16x128xf32> to vector<128xf32>
    %69 = vector.shape_cast %68 : vector<128xf32> to vector<1x128xf32>
    %70 = arith.mulf %50, %62 : vector<1x128xf32>
    %71 = arith.addf %69, %70 : vector<1x128xf32>
    %72 = vector.extract_strided_slice %42 {offsets = [2, 0], sizes = [1, 128], strides = [1, 1]} : vector<8x128xf32> to vector<1x128xf32>
    %73 = arith.mulf %44, %66 : vector<16x128xf32>
    %74 = vector.broadcast %72 : vector<1x128xf32> to vector<16x128xf32>
    %75 = arith.mulf %46, %74 : vector<16x128xf32>
    %76 = arith.addf %73, %75 : vector<16x128xf32>
    %77 = arith.mulf %48, %76 : vector<16x128xf32>
    %cst_36 = arith.constant dense<0.000000e+00> : vector<128xf32>
    %78 = vector.multi_reduction <add>, %77, %cst_36 [0] : vector<16x128xf32> to vector<128xf32>
    %79 = vector.shape_cast %78 : vector<128xf32> to vector<1x128xf32>
    %80 = arith.mulf %50, %72 : vector<1x128xf32>
    %81 = arith.addf %79, %80 : vector<1x128xf32>
    %82 = vector.extract_strided_slice %42 {offsets = [3, 0], sizes = [1, 128], strides = [1, 1]} : vector<8x128xf32> to vector<1x128xf32>
    %83 = arith.mulf %44, %76 : vector<16x128xf32>
    %84 = vector.broadcast %82 : vector<1x128xf32> to vector<16x128xf32>
    %85 = arith.mulf %46, %84 : vector<16x128xf32>
    %86 = arith.addf %83, %85 : vector<16x128xf32>
    %87 = arith.mulf %48, %86 : vector<16x128xf32>
    %cst_37 = arith.constant dense<0.000000e+00> : vector<128xf32>
    %88 = vector.multi_reduction <add>, %87, %cst_37 [0] : vector<16x128xf32> to vector<128xf32>
    %89 = vector.shape_cast %88 : vector<128xf32> to vector<1x128xf32>
    %90 = arith.mulf %50, %82 : vector<1x128xf32>
    %91 = arith.addf %89, %90 : vector<1x128xf32>
    %92 = vector.extract_strided_slice %42 {offsets = [4, 0], sizes = [1, 128], strides = [1, 1]} : vector<8x128xf32> to vector<1x128xf32>
    %93 = arith.mulf %44, %86 : vector<16x128xf32>
    %94 = vector.broadcast %92 : vector<1x128xf32> to vector<16x128xf32>
    %95 = arith.mulf %46, %94 : vector<16x128xf32>
    %96 = arith.addf %93, %95 : vector<16x128xf32>
    %97 = arith.mulf %48, %96 : vector<16x128xf32>
    %cst_38 = arith.constant dense<0.000000e+00> : vector<128xf32>
    %98 = vector.multi_reduction <add>, %97, %cst_38 [0] : vector<16x128xf32> to vector<128xf32>
    %99 = vector.shape_cast %98 : vector<128xf32> to vector<1x128xf32>
    %100 = arith.mulf %50, %92 : vector<1x128xf32>
    %101 = arith.addf %99, %100 : vector<1x128xf32>
    %102 = vector.extract_strided_slice %42 {offsets = [5, 0], sizes = [1, 128], strides = [1, 1]} : vector<8x128xf32> to vector<1x128xf32>
    %103 = arith.mulf %44, %96 : vector<16x128xf32>
    %104 = vector.broadcast %102 : vector<1x128xf32> to vector<16x128xf32>
    %105 = arith.mulf %46, %104 : vector<16x128xf32>
    %106 = arith.addf %103, %105 : vector<16x128xf32>
    %107 = arith.mulf %48, %106 : vector<16x128xf32>
    %cst_39 = arith.constant dense<0.000000e+00> : vector<128xf32>
    %108 = vector.multi_reduction <add>, %107, %cst_39 [0] : vector<16x128xf32> to vector<128xf32>
    %109 = vector.shape_cast %108 : vector<128xf32> to vector<1x128xf32>
    %110 = arith.mulf %50, %102 : vector<1x128xf32>
    %111 = arith.addf %109, %110 : vector<1x128xf32>
    %112 = vector.extract_strided_slice %42 {offsets = [6, 0], sizes = [1, 128], strides = [1, 1]} : vector<8x128xf32> to vector<1x128xf32>
    %113 = arith.mulf %44, %106 : vector<16x128xf32>
    %114 = vector.broadcast %112 : vector<1x128xf32> to vector<16x128xf32>
    %115 = arith.mulf %46, %114 : vector<16x128xf32>
    %116 = arith.addf %113, %115 : vector<16x128xf32>
    %117 = arith.mulf %48, %116 : vector<16x128xf32>
    %cst_40 = arith.constant dense<0.000000e+00> : vector<128xf32>
    %118 = vector.multi_reduction <add>, %117, %cst_40 [0] : vector<16x128xf32> to vector<128xf32>
    %119 = vector.shape_cast %118 : vector<128xf32> to vector<1x128xf32>
    %120 = arith.mulf %50, %112 : vector<1x128xf32>
    %121 = arith.addf %119, %120 : vector<1x128xf32>
    %122 = vector.extract_strided_slice %42 {offsets = [7, 0], sizes = [1, 128], strides = [1, 1]} : vector<8x128xf32> to vector<1x128xf32>
    %123 = arith.mulf %44, %116 : vector<16x128xf32>
    %124 = vector.broadcast %122 : vector<1x128xf32> to vector<16x128xf32>
    %125 = arith.mulf %46, %124 : vector<16x128xf32>
    %126 = arith.addf %123, %125 : vector<16x128xf32>
    %127 = arith.mulf %48, %126 : vector<16x128xf32>
    %cst_41 = arith.constant dense<0.000000e+00> : vector<128xf32>
    %128 = vector.multi_reduction <add>, %127, %cst_41 [0] : vector<16x128xf32> to vector<128xf32>
    %129 = vector.shape_cast %128 : vector<128xf32> to vector<1x128xf32>
    %130 = arith.mulf %50, %122 : vector<1x128xf32>
    %131 = arith.addf %129, %130 : vector<1x128xf32>
    %132 = tpu.concatenate %61, %71, %81, %91, %101, %111, %121, %131 in 0 : vector<1x128xf32>, vector<1x128xf32>, vector<1x128xf32>, vector<1x128xf32>, vector<1x128xf32>, vector<1x128xf32>, vector<1x128xf32>, vector<1x128xf32> -> vector<8x128xf32>
    %133 = arith.addf %132, %41 : vector<8x128xf32>
    %134 = tpu.iota {dimensions = array<i32: 1>} : vector<8x128xi32>
    %cst_42 = arith.constant dense<0.000000e+00> : vector<8xf32>
    %135 = vector.multi_reduction <add>, %133, %cst_42 [1] : vector<8x128xf32> to vector<8xf32>
    %136 = vector.shape_cast %135 : vector<8xf32> to vector<8x1xf32>
    %cst_43 = arith.constant 0.010416667 : f32
    %137 = vector.broadcast %cst_43 : f32 to vector<8x1xf32>
    %138 = arith.mulf %136, %137 : vector<8x1xf32>
    %c96_i32 = arith.constant 96 : i32
    %139 = vector.broadcast %c96_i32 : i32 to vector<8x128xi32>
    %140 = arith.cmpi slt, %134, %139 : vector<8x128xi32>
    %141 = vector.broadcast %138 : vector<8x1xf32> to vector<8x128xf32>
    %142 = arith.subf %133, %141 : vector<8x128xf32>
    %cst_44 = arith.constant 0.000000e+00 : f32
    %143 = vector.broadcast %cst_44 : f32 to vector<8x128xf32>
    %144 = arith.select %140, %142, %143 : vector<8x128xi1>, vector<8x128xf32>
    %145 = arith.mulf %144, %144 : vector<8x128xf32>
    %cst_45 = arith.constant dense<0.000000e+00> : vector<8xf32>
    %146 = vector.multi_reduction <add>, %145, %cst_45 [1] : vector<8x128xf32> to vector<8xf32>
    %147 = vector.shape_cast %146 : vector<8xf32> to vector<8x1xf32>
    %cst_46 = arith.constant 0.010416667 : f32
    %148 = vector.broadcast %cst_46 : f32 to vector<8x1xf32>
    %149 = arith.mulf %147, %148 : vector<8x1xf32>
    %cst_47 = arith.constant 9.99999974E-6 : f32
    %150 = vector.broadcast %cst_47 : f32 to vector<8x1xf32>
    %151 = arith.addf %149, %150 : vector<8x1xf32>
    %152 = math.rsqrt %151 : vector<8x1xf32>
    %153 = vector.broadcast %152 : vector<8x1xf32> to vector<8x128xf32>
    %154 = arith.mulf %144, %153 : vector<8x128xf32>
    %c0_48 = arith.constant 0 : index
    %c0_49 = arith.constant 0 : index
    %c0_50 = arith.constant 0 : index
    %155 = vector.load %arg12[%c0_48, %c0_49, %c0_50] : memref<1x1x128xf32, #tpu.memory_space<vmem>>, vector<1x1x128xf32>
    %156 = vector.shape_cast %155 : vector<1x1x128xf32> to vector<1x128xf32>
    %157 = vector.broadcast %156 : vector<1x128xf32> to vector<8x128xf32>
    %158 = arith.mulf %154, %157 : vector<8x128xf32>
    %c0_51 = arith.constant 0 : index
    %c0_52 = arith.constant 0 : index
    %c0_53 = arith.constant 0 : index
    %159 = vector.load %arg13[%c0_51, %c0_52, %c0_53] : memref<1x1x128xf32, #tpu.memory_space<vmem>>, vector<1x1x128xf32>
    %160 = vector.shape_cast %159 : vector<1x1x128xf32> to vector<1x128xf32>
    %161 = vector.broadcast %160 : vector<1x128xf32> to vector<8x128xf32>
    %162 = arith.addf %158, %161 : vector<8x128xf32>
    %163 = arith.truncf %162 : vector<8x128xf32> to vector<8x128xbf16>
    %c0_54 = arith.constant 0 : index
    %c0_55 = arith.constant 0 : index
    %c0_56 = arith.constant 0 : index
    %164 = vector.load %arg14[%c0_54, %c0_55, %c0_56] : memref<1x128x128xbf16, #tpu.memory_space<vmem>>, vector<1x128x128xbf16>
    %165 = vector.shape_cast %164 : vector<1x128x128xbf16> to vector<128x128xbf16>
    %cst_57 = arith.constant dense<0.000000e+00> : vector<8x128xf32>
    %166 = tpu.matmul %163, %165, %cst_57 {dimension_numbers = #tpu.dot_dimension_numbers<[1], [0], [0], [1], [0, 0, 1, 1], [], []>} : vector<8x128xbf16>, vector<128x128xbf16>, vector<8x128xf32> -> vector<8x128xf32>
    %c0_58 = arith.constant 0 : index
    %c0_59 = arith.constant 0 : index
    %c0_60 = arith.constant 0 : index
    %167 = vector.load %arg15[%c0_58, %c0_59, %c0_60] : memref<1x1x128xf32, #tpu.memory_space<vmem>>, vector<1x1x128xf32>
    %168 = vector.shape_cast %167 : vector<1x1x128xf32> to vector<1x128xf32>
    %169 = vector.broadcast %168 : vector<1x128xf32> to vector<8x128xf32>
    %170 = arith.addf %166, %169 : vector<8x128xf32>
    %171 = arith.truncf %170 : vector<8x128xf32> to vector<8x128xbf16>
    %c0_61 = arith.constant 0 : index
    %c0_62 = arith.constant 0 : index
    %c0_63 = arith.constant 0 : index
    %c0_64 = arith.constant 0 : index
    %172 = vector.load %arg16[%c0_61, %c0_62, %c0_63, %c0_64] : memref<1x1x8x128xbf16, #tpu.memory_space<vmem>>, vector<1x1x8x128xbf16>
    %173 = vector.shape_cast %172 : vector<1x1x8x128xbf16> to vector<8x128xbf16>
    %174 = vector.shape_cast %171 : vector<8x128xbf16> to vector<1x1x8x128xbf16>
    tpu.vector_store %arg16[%c0_61, %c0_62, %c0_63, %c0_64], %174 {strides = array<i32>} : memref<1x1x8x128xbf16, #tpu.memory_space<vmem>>, vector<1x1x8x128xbf16>,
    return
  }
  func.func @transform_0(%arg0: i32, %arg1: i32) -> (i32, i32, i32, i32) {
    %c0_i32 = arith.constant 0 : i32
    %c0_i32_0 = arith.constant 0 : i32
    %c0_i32_1 = arith.constant 0 : i32
    return %arg0, %arg1, %c0_i32, %c0_i32_0 : i32, i32, i32, i32
  }
  func.func @transform_1(%arg0: i32, %arg1: i32) -> (i32, i32, i32) {
    %c0_i32 = arith.constant 0 : i32
    %c0_i32_0 = arith.constant 0 : i32
    %c0_i32_1 = arith.constant 0 : i32
    return %arg1, %c0_i32, %c0_i32_0 : i32, i32, i32
  }
  func.func @transform_2(%arg0: i32, %arg1: i32) -> (i32, i32, i32) {
    %c0_i32 = arith.constant 0 : i32
    %c0_i32_0 = arith.constant 0 : i32
    %c0_i32_1 = arith.constant 0 : i32
    return %arg0, %c0_i32, %c0_i32_0 : i32, i32, i32
  }
  func.func @transform_3(%arg0: i32, %arg1: i32) -> (i32, i32, i32) {
    %c0_i32 = arith.constant 0 : i32
    %c0_i32_0 = arith.constant 0 : i32
    %c0_i32_1 = arith.constant 0 : i32
    return %arg0, %c0_i32, %c0_i32_0 : i32, i32, i32
  }
  func.func @transform_4(%arg0: i32, %arg1: i32) -> (i32, i32, i32) {
    %c0_i32 = arith.constant 0 : i32
    %c0_i32_0 = arith.constant 0 : i32
    %c0_i32_1 = arith.constant 0 : i32
    return %arg0, %c0_i32, %c0_i32_0 : i32, i32, i32
  }
  func.func @transform_5(%arg0: i32, %arg1: i32) -> (i32, i32, i32) {
    %c0_i32 = arith.constant 0 : i32
    %c0_i32_0 = arith.constant 0 : i32
    %c0_i32_1 = arith.constant 0 : i32
    return %arg0, %c0_i32, %c0_i32_0 : i32, i32, i32
  }
  func.func @transform_6(%arg0: i32, %arg1: i32) -> (i32, i32, i32) {
    %c0_i32 = arith.constant 0 : i32
    %c0_i32_0 = arith.constant 0 : i32
    %c0_i32_1 = arith.constant 0 : i32
    return %arg0, %c0_i32, %c0_i32_0 : i32, i32, i32
  }
  func.func @transform_7(%arg0: i32, %arg1: i32) -> (i32, i32, i32) {
    %c0_i32 = arith.constant 0 : i32
    %c0_i32_0 = arith.constant 0 : i32
    %c0_i32_1 = arith.constant 0 : i32
    return %arg0, %c0_i32, %c0_i32_0 : i32, i32, i32
  }
  func.func @transform_8(%arg0: i32, %arg1: i32) -> (i32, i32, i32) {
    %c0_i32 = arith.constant 0 : i32
    %c0_i32_0 = arith.constant 0 : i32
    %c0_i32_1 = arith.constant 0 : i32
    return %arg0, %c0_i32, %c0_i32_0 : i32, i32, i32
  }
  func.func @transform_9(%arg0: i32, %arg1: i32) -> (i32, i32, i32) {
    %c0_i32 = arith.constant 0 : i32
    %c0_i32_0 = arith.constant 0 : i32
    %c0_i32_1 = arith.constant 0 : i32
    return %arg0, %c0_i32, %c0_i32_0 : i32, i32, i32
  }
  func.func @transform_10(%arg0: i32, %arg1: i32) -> (i32, i32, i32) {
    %c0_i32 = arith.constant 0 : i32
    %c0_i32_0 = arith.constant 0 : i32
    %c0_i32_1 = arith.constant 0 : i32
    return %arg0, %c0_i32, %c0_i32_0 : i32, i32, i32
  }
  func.func @transform_11(%arg0: i32, %arg1: i32) -> (i32, i32, i32) {
    %c0_i32 = arith.constant 0 : i32
    %c0_i32_0 = arith.constant 0 : i32
    %c0_i32_1 = arith.constant 0 : i32
    return %arg0, %c0_i32, %c0_i32_0 : i32, i32, i32
  }
  func.func @transform_12(%arg0: i32, %arg1: i32) -> (i32, i32, i32) {
    %c0_i32 = arith.constant 0 : i32
    %c0_i32_0 = arith.constant 0 : i32
    %c0_i32_1 = arith.constant 0 : i32
    return %arg0, %c0_i32, %c0_i32_0 : i32, i32, i32
  }
  func.func @transform_13(%arg0: i32, %arg1: i32) -> (i32, i32, i32) {
    %c0_i32 = arith.constant 0 : i32
    %c0_i32_0 = arith.constant 0 : i32
    %c0_i32_1 = arith.constant 0 : i32
    return %arg0, %c0_i32, %c0_i32_0 : i32, i32, i32
  }
  func.func @transform_14(%arg0: i32, %arg1: i32) -> (i32, i32, i32, i32) {
    %c0_i32 = arith.constant 0 : i32
    %c0_i32_0 = arith.constant 0 : i32
    %c0_i32_1 = arith.constant 0 : i32
    return %arg0, %arg1, %c0_i32, %c0_i32_0 : i32, i32, i32, i32
  }
}

</mosaic_0001>

<bundles_post_ra>
// kernel: hierarchical_music_generator.1
= control target key start
LH: loop header
LB: loop body
LE: loop exit
PB: predicated region body
PF: predicated region fallthrough
CT: control target
= control target key end

     0   :  { %s2104_s29 = smov 0   ;;  %s2106_s30 = smov 0   ;;  %s2382_s0 = inlined_call_operand.vmem [shape: f32[2,2,8,16], index: 0, kind: input, shape index: {}]   ;;  %s2383_s1 = inlined_call_operand.vmem [shape: f32[2,1,16], index: 1, kind: input, shape index: {}]   ;;  %s2384_s2 = inlined_call_operand.vmem [shape: bf16[2,288,128], index: 2, kind: input, shape index: {}]   ;;  %s2385_s3 = inlined_call_operand.vmem [shape: f32[2,1,128], index: 3, kind: input, shape index: {}]   ;;  %s2386_s4 = inlined_call_operand.vmem [shape: bf16[2,32,256], index: 4, kind: input, shape index: {}]   ;;  %s2387_s5 = inlined_call_operand.vmem [shape: f32[2,1,256], index: 5, kind: input, shape index: {}]   ;;  %s2388_s6 = inlined_call_operand.vmem [shape: f32[2,16,128], index: 6, kind: input, shape index: {}]   ;;  %s2389_s7 = inlined_call_operand.vmem [shape: f32[2,16,128], index: 7, kind: input, shape index: {}]   ;;  %s2390_s8 = inlined_call_operand.vmem [shape: f32[2,16,128], index: 8, kind: input, shape index: {}]   ;;  %s2391_s9 = inlined_call_operand.vmem [shape: f32[2,1,128], index: 9, kind: input, shape index: {}]   ;;  %s2392_s10 = inlined_call_operand.vmem [shape: f32[2,1,128], index: 10, kind: input, shape index: {}]   ;;  %s2393_s11 = inlined_call_operand.vmem [shape: f32[2,1,128], index: 11, kind: input, shape index: {}]   ;;  %s2394_s12 = inlined_call_operand.vmem [shape: bf16[2,128,128], index: 12, kind: input, shape index: {}]   ;;  %s2395_s13 = inlined_call_operand.vmem [shape: f32[2,1,128], index: 13, kind: input, shape index: {}]   ;;  %s2396_s14 = inlined_call_operand.vmem [shape: bf16[2,2,8,128], index: 14, kind: output, shape index: {}]  }
   0x1   :  { %s2108_s15 = smov 0   ;;  %s2110_s16 = smov 0  }
   0x2   :  { %s2112_s17 = smov 0  }
   0x3 LB: > { %2398 = sst [smem:[#allocation2_spill]] %s2015_s16  ;;  %s33_s18 = sadd.s32 1, %s2011_s15  ;;  %s2019_s17 = sphi %s2112_s17, %s24_s17   ;;  %s2015_s16 = sphi %s2110_s16, %s2403_s16   ;;  %s2011_s15 = sphi %s2108_s15, %s2405_s15   ;;  %s2007_s30 = sphi %s2106_s30, %s2401_s30   ;;  %s2003_s29 = sphi %s2104_s29, %s2404_s29  }
   0x4   : > { %s36_s19 = sadd.s32 1, %s2015_s16  ;;  %p34_p0 = scmp.ge.s32.totalorder %s33_s18, 2 }
   0x5   : > { %p1755_p1 = scmp.ge.s32.totalorder %s2019_s17, 1  ;;  %p548_p2 = scmp.lt.s32.totalorder %s2019_s17, 5 }
   0x6   : > { %s2407_s18 = smov (%p34_p0, %s33_s18), 0  ;;  %s2409_s19 = smov (!%p34_p0, %s36_s19), %s2015_s16 }
   0x7   : > { %2399 = sst [smem:[#allocation3_spill]] %s2407_s18  ;;  %p549_p3 = pnand %p1755_p1, %p548_p2 }
   0x8   : > { %p38_p4 = scmp.ge.s32.totalorder %s2409_s19, 2  ;;  %p654_p5 = scmp.lt.s32.totalorder (!%p549_p3), %s2003_s29, 1 }
   0x9   : > { %552 = sbr.rel (%p549_p3) target bundleno = 1037 (0x40d), region = 76  ;;  %p652_p6 = scmp.lt.s32.totalorder (!%p549_p3), %s2007_s30, 1 }
   0xa   : > { %s2411_s19 = smov (%p38_p4, %s2409_s19), 0  ;;  %s2022_s24 = smov (!%p549_p3), 16  }
   0xb   : > { %2400 = sst [smem:[#allocation4_spill]] %s2411_s19 }
   0xe   : > { %v2021_v0 = vmov 0   ;;  %s2413_s29 = smov (!%p654_p5, %s2003_s29), 1  ;;  %s2415_s30 = smov (!%p652_p6, %s2007_s30), 1  ;;  %v2023_v11 = vmov 0.0   ;;  %vm731_vm0 = vcmask 130048   ;;  %vm736_vm1 = vcmask 1045504  }
   0xf   : > { %1103 = vmatprep.mubr.bf16.mxu1 %v2021_v0  ;;  %s662_s22 = scalar_lea.vmem %s2383_s1, %s2413_s29  ;;  %s1879_s23 = smul.u32 144, %s2415_s30  ;;  %vm785_vm2 = vcmask 261120   ;;  %vm747_vm3 = vcmask 1043456   ;;  %vm766_vm4 = vcmask 1040384   ;;  %vm754_vm5 = vcmask 1042432  }
  0x10   : > { %v1772_v1 = vld [vmem:[%s662_s22] ss:$0 sm:$0xff]  ;;  %s1812_s25 = sshll.u32 %s2415_s30, 5  ;;  %s1756_s18 = sshll.u32 %s2415_s30, 1  ;;  %v777_v30 = vrot.slane %v2023_v11, 2  ;;  %vm2026_vm6 = vmmov 0  }
  0x11   : > { %728 = vrot.lane.b32.xlu0 %v1772_v1, %s2022_s24  ;;  %s675_s28 = scalar_lea.vmem %s2386_s4, %s1812_s25  ;;  %s2150_s16 = scalar_lea.vmem %s2384_s2, %s1879_s23  ;;  %vm761_vm7 = vcmask 1041408   ;;  %vm787_vm8 = vcmask 523264   ;;  %vm789_vm9 = vcmask 785408   ;;  %vm1376_vm10 = vcmask 1044480  }
  0x12   : > { %v1943_v2 = vld [vmem:[%s675_s28 + $0x14] ss:$8 sps:$4 sm:$0xff]   ;;  %v1945_v3 = vld [vmem:[%s675_s28 + $0x10] ss:$8 sps:$4 sm:$0xff]   ;;  %v1946_v4 = vld [vmem:[%s675_s28 + $0x4] ss:$8 sps:$4 sm:$0xff]   ;;  %s2169_s19 = sadd.s32 %s1756_s18, %s2413_s29  ;;  %s700_s27 = scalar_lea.vmem %s2392_s10, %s2415_s30 }
  0x13   : > { %1083 = vmatprep.subr.bf16.mxu1 %v1943_v2  ;;  %v1948_v5 = vld [vmem:[%s675_s28] ss:$8 sps:$4 sm:$0xff]   ;;  %v1949_v6 = vld [vmem:[%s2150_s16 + $0x78] sm:$0xff]   ;;  %v1951_v8 = vld [vmem:[%s2150_s16 + $0x70] sm:$0xff]   ;;  %s1757_s20 = sshll.u32 %s2169_s19, 3  ;;  %s2024_s29 = smov 64  }
  0x14   : > { %1084 = vmatpush1.bf16.msra.mxu1 %v1945_v3  ;;  %v1950_v7 = vld [vmem:[%s2150_s16 + $0x38] sm:$0xff]   ;;  %1817 = vmatprep.subr.bf16.mxu0 %v1949_v6  ;;  %v1952_v9 = vld [vmem:[%s2150_s16 + $0x30] sm:$0xff]   ;;  %v1953_v10 = vld [vmem:[%s2150_s16 + $0x68] sm:$0xff]   ;;  %s659_s23 = scalar_lea.vmem %s2382_s0, %s1757_s20  ;;  %s2025_s24 = smov 32   ;;  %vm1379_vm11 = vcmask 1046528  }
  0x15   : > { %1085 = vmatprep.subr.bf16.mxu1 %v1946_v4  ;;  %1818 = vmatpush3.bf16.msra.mxu0 %v1950_v7  ;;  %v1954_v12 = vld [vmem:[%s2150_s16 + $0x28] sm:$0xff]   ;;  %v1955_v13 = vld [vmem:[%s2150_s16 + $0x60] sm:$0xff]   ;;  %v1957_v15 = vld [vmem:[%s2150_s16 + $0x58] sm:$0xff]   ;;  %s2027_s25 = smov 96   ;;  %v782_v4 = vrot.slane %v2023_v11, 4  ;;  %s670_s20 = scalar_lea.vmem %s2385_s3, %s2415_s30 }
  0x16   : > { %1819 = vmatprep.subr.bf16.mxu0 %v1951_v8  ;;  %v1956_v14 = vld [vmem:[%s2150_s16 + $0x20] sm:$0xff]   ;;  %v1958_v16 = vld [vmem:[%s2150_s16 + $0x18] sm:$0xff]   ;;  %v1959_v17 = vld [vmem:[%s2150_s16 + $0x50] sm:$0xff]   ;;  %v1038_v8 = vlaneseq  ;;  %s1813_s21 = sshll.u32 %s2415_s30, 4  ;;  %s1816_s22 = sshll.u32 %s2415_s30, 6 }
  0x17   : > { %v1960_v18 = vld [vmem:[%s2150_s16 + $0x10] sm:$0xff]   ;;  %v721_v19 = vld [vmem:[%s659_s23] sm:$0xff]  ;;  %v1961_v20 = vld [vmem:[%s2150_s16 + $0x48] sm:$0xff]   ;;  %s689_s26 = scalar_lea.vmem %s2389_s7, %s1813_s21  ;;  %s694_s28 = scalar_lea.vmem %s2390_s8, %s1813_s21 }
  0x18   : > { %1086 = vmatpush1.bf16.msra.mxu1 %v1948_v5  ;;  %v1962_v21 = vld [vmem:[%s2150_s16 + $0x8] sm:$0xff]   ;;  %v1963_v24 = vld [vmem:[%s2150_s16 + $0x40] sm:$0xff]   ;;  %s1771_s23 = sshll.u32 %s2169_s19, 2 }
  0x19   : > { %1859 = vmatprep.subr.bf16.mxu1 %v2023_v11  ;;  %1820 = vmatpush3.bf16.msra.mxu0 %v1952_v9  ;;  %v1964_v25 = vld [vmem:[%s2150_s16] sm:$0xff]   ;;  %v1965_v3 = vld [vmem:[%s2150_s16 + $0x88] sm:$0xff]   ;;  %v2211_v9 = vshrl.u32 %v1038_v8, 7 }
  0x1a   : > { %1821 = vmatprep.subr.bf16.mxu0 %v1953_v10  ;;  %v1966_v5 = vld [vmem:[%s2150_s16 + $0x80] sm:$0xff]   ;;  %s679_s16 = scalar_lea.vmem %s2387_s5, %s1756_s18  ;;  %s703_s18 = scalar_lea.vmem %s2393_s11, %s2415_s30 }
  0x1b   : > { %v1044_v10 = vsub.s32 1, %v2211_v9 }
  0x1d   : > { %1822 = vmatpush3.bf16.msra.mxu0 %v1954_v12  ;;  %v1036_v12 = vld [vmem:[%s679_s16] sm:$0x3] }
  0x1e   : > { %1823 = vmatprep.subr.bf16.mxu0 %v1955_v13  ;;  %v1045_v13 = vrot.slane %v1036_v12, %v1044_v10 }
  0x21   : > { %1824 = vmatpush3.bf16.msra.mxu0 %v1956_v14 }
  0x22   : > { %1825 = vmatprep.subr.bf16.mxu0 %v1957_v15 }
  0x25   : > { %1826 = vmatpush3.bf16.msra.mxu0 %v1958_v16 }
  0x26   : > { %1827 = vmatprep.subr.bf16.mxu0 %v1959_v17 }
  0x29   : > { %1828 = vmatpush3.bf16.msra.mxu0 %v1960_v18 }
  0x2a   : > { %1829 = vmatprep.subr.bf16.mxu0 %v1961_v20 }
  0x2d   : > { %1830 = vmatpush3.bf16.msra.mxu0 %v1962_v21 }
  0x2e   : > { %1831 = vmatprep.subr.bf16.mxu0 %v1963_v24 }
  0x31   : > { %1832 = vmatpush3.bf16.msra.mxu0 %v1964_v25 }
  0x32   : > { %1851 = vmatprep.subr.bf16.mxu0 %v2023_v11 }
  0x83   : > { %v729_v22 = vpop.permute.xlu0 %728 }
  0x84   : > { %v732_v23 = vsel %vm731_vm0, %v721_v19, %v729_v22  ;;  %v1040_v19 = vsub.s32 0, %v2211_v9 }
  0x85   : > { %v734_v26 = vrot.slane %v732_v23, 2  ;;  %v1031_v27 = vpack.c.bf16 %v732_v23, %v732_v23 }
  0x86   : > { %v1041_v20 = vrot.slane %v1036_v12, %v1040_v19 }
  0x87   : > { %v737_v28 = vsel %vm736_vm1, 0.0, %v734_v26  ;;  %v2181_v29 = vsel %vm736_vm1, %v734_v26, 0.0  ;;  %1797 = vmatmul.mubr.msk.bf16.vlgmr.msra.gmra.mxu1 %vm785_vm2, %v1031_v27 }
  0x88   : > { %v748_v31 = vrot.slane %v737_v28, 4  ;;  %v749_v32 = vrot.slane %v2181_v29, 4  ;;  %v741_v33 = vrot.slane %v737_v28, 2  ;;  %v742_v34 = vrot.slane %v2181_v29, 2  ;;  %1875 = vmatprep.mubr.msk.bf16.mxu1 %vm2026_vm6, %v2023_v11 }
  0x89   : > { %v767_v35 = vrot.slane %v737_v28, 7  ;;  %v768_v36 = vrot.slane %v2181_v29, 7  ;;  %v755_v37 = vrot.slane %v737_v28, 5  ;;  %v756_v38 = vrot.slane %v2181_v29, 5 }
  0x8a   : > { %v750_v39 = vsel %vm747_vm3, %v748_v31, %v749_v32  ;;  %v743_v40 = vsel %vm736_vm1, %v741_v33, %v742_v34  ;;  %v778_v45 = vsel %vm736_vm1, %v742_v34, %v777_v30  ;;  %v762_v47 = vrot.slane %v737_v28, 6 }
  0x8b   : > { %v1933_v41 = vpack.i.bf16 %v750_v39, %v2181_v29  ;;  %v769_v42 = vsel %vm766_vm4, %v767_v35, %v768_v36  ;;  %v757_v44 = vsel %vm754_vm5, %v755_v37, %v756_v38  ;;  %v763_v48 = vrot.slane %v2181_v29, 6  ;;  %v1773_v29 = vld [vmem:[%s670_s20] ss:$0 sm:$0xff] }
  0x8c   : > { %v1928_v43 = vpack.i.bf16 %v743_v40, %v769_v42  ;;  %v1938_v46 = vpack.i.bf16 %v757_v44, %v778_v45  ;;  %v783_v6 = vsel %vm747_vm3, %v749_v32, %v782_v4  ;;  %v2239_v40 = vld [vmem:[%s689_s26] sm:$0xff] }
  0x8d   : > { %1934 = vrot.lane.b32.xlu1 %v1933_v41, %s2024_s29  ;;  %v764_v55 = vsel %vm761_vm7, %v762_v47, %v763_v48  ;;  %v796_v7 = vpack.c.bf16 %v783_v6, %v783_v6  ;;  %s684_s29 = scalar_lea.vmem %s2388_s6, %s1813_s21  ;;  %v2241_v41 = vld [vmem:[%s689_s26 + $0x8] sm:$0xff]  ;;  %s697_s21 = scalar_lea.vmem %s2391_s9, %s2415_s30 }
  0x8e   : > { %1929 = vrot.lane.b32.xlu0 %v1928_v43, %s2025_s24  ;;  %v2233_v36 = vld [vmem:[%s684_s29] sm:$0xff]  ;;  %v2235_v37 = vld [vmem:[%s684_s29 + $0x8] sm:$0xff]  ;;  %s708_s24 = scalar_lea.vmem %s2394_s12, %s1816_s22  ;;  %s711_s22 = scalar_lea.vmem %s2395_s13, %s2415_s30 }
  0x8f   : > { %v1126_v42 = vmul.f32 0.0, %v2233_v36  ;;  %v1127_v43 = vmul.f32 0.0, %v2235_v37 }
  0x91   : > { %1939 = vrot.lane.b32.xlu1 %v1938_v46, %s2027_s25  ;;  %v1196_v46 = vsub.s32 2, %v2211_v9  ;;  %s719_s25 = scalar_lea.vmem %s2396_s14, %s1771_s23 }
  0xff   : > { %v1935_v49 = vpop.permute.xlu1 %1934 }
 0x100   : > { %v1930_v50 = vpop.permute.xlu0 %1929  ;;  %v1937_v51 = vunpack.i.h.bf16 %v1935_v49  ;;  %v1936_v52 = vunpack.i.l.bf16 %v1935_v49 }
 0x101   : > { %v1932_v53 = vunpack.i.h.bf16 %v1930_v50  ;;  %v1931_v54 = vunpack.i.l.bf16 %v1930_v50 }
 0x103   : > { %v786_v56 = vsel %vm785_vm2, %v737_v28, %v1932_v53  ;;  %v1940_v57 = vpop.permute.xlu1 %1939  ;;  %v791_v58 = vsel %vm785_vm2, %v764_v55, %v1931_v54  ;;  %v1219_v53 = vsub.s32 3, %v2211_v9 }
 0x104   : > { %v1942_v59 = vunpack.i.h.bf16 %v1940_v57  ;;  %v1941_v60 = vunpack.i.l.bf16 %v1940_v57  ;;  %v792_v61 = vsel %vm787_vm8, %v791_v58, %v1936_v52  ;;  %v788_v62 = vsel %vm787_vm8, %v786_v56, %v1937_v51 }
 0x106   : > { %v793_v63 = vsel %vm789_vm9, %v792_v61, %v1941_v60  ;;  %v790_v0 = vsel %vm789_vm9, %v788_v62, %v1942_v59  ;;  %v2028_v60 = vmov 1966171168   ;;  %v2259_v62 = vld [vmem:[%s694_s28] sm:$0xff] }
 0x107   : > { %v795_v1 = vpack.c.bf16 %v793_v63, %v793_v63  ;;  %v794_v2 = vpack.c.bf16 %v790_v0, %v790_v0  ;;  %v1168_v61 = vunpack.c.l.s4 %v2028_v60  ;;  %v2261_v63 = vld [vmem:[%s694_s28 + $0x8] sm:$0xff] }
 0x109   : > { %983 = vmatprep.mubr.bf16.mxu0 %v795_v1  ;;  %v1242_v1 = vsub.s32 4, %v2211_v9 }
 0x10a   : > { %984 = vmatmul.mubr.bf16.vlgmr.msra.gmra.mxu0 %v794_v2 }
 0x10b   : > { %1852 = vmatpush3.bf16.msra.mxu0 %v1965_v3  ;;  %1855 = vmatprep.mubr.msk.bf16.mxu0 %vm2026_vm6, %v2023_v11 }
 0x10c   : > { %1853 = vmatprep.subr.bf16.mxu0 %v2023_v11 }
 0x10f   : > { %1854 = vmatpush3.bf16.msra.mxu0 %v1966_v5 }
 0x112   : > { %1856 = vmatmul.mubr.msk.bf16.vlgmr.msra.gmra.mxu0 %vm785_vm2, %v796_v7 }
 0x147   : > { %v1105_v14 = vpop.f32.mrf.mxu1 }
 0x148   : > { %v1106_v21 = vadd.f32 %v1105_v14, %v1041_v20 }
 0x149   : > { %v1107_v15 = vpop.f32.mrf.mxu1 }
 0x14a   : > { %v2219_v16 = vadd.f32 %v1107_v15, %v1045_v13  ;;  %v1798_v22 = vmul.f32 -1.442695, %v1106_v21  ;;  %v1169_v13 = vunpack.c.0.s8 %v1168_v61 }
 0x14b   : > { %v1109_v17 = vpop.f32.mrf.mxu1 }
 0x14c   : > { %1975 = vpow2.f32 %v1798_v22 }
 0x14d   : > { %v1110_v18 = vpop.f32.mrf.mxu1 }
 0x14e   : > { %v1279_v18 = vsub.s32 5, %v2211_v9 }
 0x159   : > { %v1976_v23 = vpop.eup %1975 }
 0x15a   : > { %v1115_v24 = vadd.f32 1.0, %v1976_v23 }
 0x15c   : > { %1977 = vrcp.f32 %v1115_v24 }
 0x169   : > { %v1978_v34 = vpop.eup %1977 }
 0x1ca   : > { %v1833_v25 = vpop.f32.mrf.mxu0 }
 0x1cc   : > { %v1834_v26 = vpop.f32.mrf.mxu0 }
 0x1cd   : > { %v1835_v27 = vadd.f32 %v1834_v26, %v1833_v25 }
 0x1ce   : > { %v1836_v28 = vpop.f32.mrf.mxu0 }
 0x1cf   : > { %v986_v31 = vadd.f32 %v1835_v27, %v1773_v29  ;;  %v2282_v27 = vsub.s32 %v1169_v13, %v2211_v9  ;;  %v1309_v29 = vsub.s32 6, %v2211_v9 }
 0x1d0   : > { %v1837_v30 = vpop.f32.mrf.mxu0 }
 0x1d2   : > { %v1025_v32 = vpop.f32.mrf.mxu0 }
 0x1d3   : > { %v1026_v33 = vadd.f32 %v1025_v32, %v986_v31 }
 0x1d4   : > { %v1857_v35 = vpop.f32.mrf.mxu0 }
 0x1d5   : > { %v2237_v38 = vmul.f32 %v1978_v34, %v1026_v33  ;;  %v1332_v33 = vsub.s32 7, %v2211_v9 }
 0x1d6   : > { %v1028_v39 = vpop.f32.mrf.mxu0 }
 0x1d7   : > { %v1131_v44 = vrot.slane %v2237_v38, %v1040_v19  ;;  %v1152_v49 = vrot.slane %v2237_v38, %v1044_v10  ;;  %v1197_v52 = vrot.slane %v2237_v38, %v1196_v46  ;;  %v1220_v0 = vrot.slane %v2237_v38, %v1219_v53 }
 0x1d8   : > { %v1858_v45 = vpop.f32.mrf.mxu0  ;;  %v1243_v17 = vrot.slane %v2237_v38, %v1242_v1  ;;  %v1280_v32 = vrot.slane %v2237_v38, %v1279_v18  ;;  %v1257_v9 = vcombine.high %v2237_v38, %v2237_v38  ;;  %v1310_v53 = vrot.slane %v2237_v38, %v1309_v29 }
 0x1d9   : > { %v1132_v47 = vmul.f32 %v1131_v44, %v2239_v40  ;;  %v1133_v48 = vmul.f32 %v1131_v44, %v2241_v41  ;;  %v1153_v56 = vmul.f32 %v1152_v49, %v2239_v40  ;;  %v1154_v57 = vmul.f32 %v1152_v49, %v2241_v41 }
 0x1da   : > { %v1198_v5 = vmul.f32 %v1197_v52, %v2239_v40  ;;  %v1199_v7 = vmul.f32 %v1197_v52, %v2241_v41  ;;  %v1221_v22 = vmul.f32 %v1220_v0, %v2239_v40  ;;  %v1222_v25 = vmul.f32 %v1220_v0, %v2241_v41 }
 0x1db   : > { %v1134_v50 = vadd.f32 %v1132_v47, %v1126_v42  ;;  %v1135_v51 = vadd.f32 %v1133_v48, %v1127_v43  ;;  %v1244_v42 = vmul.f32 %v1243_v17, %v2239_v40  ;;  %v1245_v46 = vmul.f32 %v1243_v17, %v2241_v41 }
 0x1dc   : > { %v1173_v48 = vrot.slane %v2237_v38, %v2282_v27  ;;  %v1281_v52 = vmul.f32 %v1280_v32, %v2239_v40  ;;  %v1264_v18 = vrot.slane %v1257_v9, %v2282_v27 }
 0x1dd   : > { %v1147_v54 = vmul.f32 %v1134_v50, %v2233_v36  ;;  %v1148_v55 = vmul.f32 %v1135_v51, %v2235_v37  ;;  %v1136_v10 = vmul.f32 %v1134_v50, %v2259_v62  ;;  %v1137_v12 = vmul.f32 %v1135_v51, %v2261_v63 }
 0x1de   : > { %v1174_v1 = vcombine.high %v1173_v48, %v1173_v48 }
 0x1df   : > { %v1155_v58 = vadd.f32 %v1153_v56, %v1147_v54  ;;  %v1156_v59 = vadd.f32 %v1154_v57, %v1148_v55  ;;  %v1138_v26 = vadd.f32 %v1137_v12, %v1136_v10  ;;  %v1282_v57 = vmul.f32 %v1280_v32, %v2241_v41 }
 0x1e1   : > { %v1157_v2 = vmul.f32 %v1155_v58, %v2259_v62  ;;  %v1158_v3 = vmul.f32 %v1156_v59, %v2261_v63  ;;  %v1192_v4 = vmul.f32 %v1155_v58, %v2233_v36  ;;  %v1193_v6 = vmul.f32 %v1156_v59, %v2235_v37 }
 0x1e2   : > { %v1139_v47 = vrot.slane %v1138_v26, 4 }
 0x1e3   : > { %v1200_v14 = vadd.f32 %v1198_v5, %v1192_v4  ;;  %v1201_v15 = vadd.f32 %v1199_v7, %v1193_v6  ;;  %v1159_v19 = vadd.f32 %v1158_v3, %v1157_v2  ;;  %v2305_v2 = vrot.slane %v1173_v48, %v2282_v27 }
 0x1e4   : > { %v1140_v0 = vadd.f32 %v1139_v47, %v1138_v26  ;;  %v1333_v7 = vrot.slane %v2237_v38, %v1332_v33 }
 0x1e5   : > { %v1202_v20 = vmul.f32 %v1200_v14, %v2259_v62  ;;  %v1215_v21 = vmul.f32 %v1200_v14, %v2233_v36  ;;  %v1203_v23 = vmul.f32 %v1201_v15, %v2261_v63  ;;  %v1216_v24 = vmul.f32 %v1201_v15, %v2235_v37 }
 0x1e6   : > { %v1160_v34 = vrot.slane %v1159_v19, 4  ;;  %v1311_v14 = vmul.f32 %v1310_v53, %v2239_v40 }
 0x1e7   : > { %v1223_v28 = vadd.f32 %v1221_v22, %v1215_v21  ;;  %v1204_v30 = vadd.f32 %v1203_v23, %v1202_v20  ;;  %v1224_v31 = vadd.f32 %v1222_v25, %v1216_v24  ;;  %v1312_v22 = vmul.f32 %v1310_v53, %v2241_v41 }
 0x1e8   : > { %v1161_v54 = vadd.f32 %v1160_v34, %v1159_v19  ;;  %v1141_v24 = vrot.slane %v1140_v0, 2 }
 0x1e9   : > { %v1225_v35 = vmul.f32 %v1223_v28, %v2259_v62  ;;  %v1238_v39 = vmul.f32 %v1223_v28, %v2233_v36  ;;  %v1205_v43 = vrot.slane %v1204_v30, 4  ;;  %v1226_v44 = vmul.f32 %v1224_v31, %v2261_v63 }
 0x1ea   : > { %v1239_v45 = vmul.f32 %v1224_v31, %v2235_v37  ;;  %v1162_v10 = vrot.slane %v1161_v54, 2  ;;  %v1334_v28 = vmul.f32 %v1333_v7, %v2239_v40  ;;  %v1188_v40 = vrot.slane %v1174_v1, %v2282_v27 }
 0x1eb   : > { %v1246_v49 = vadd.f32 %v1244_v42, %v1238_v39  ;;  %v1227_v50 = vadd.f32 %v1226_v44, %v1225_v35  ;;  %v1206_v58 = vadd.f32 %v1205_v43, %v1204_v30  ;;  %v1335_v39 = vmul.f32 %v1333_v7, %v2241_v41 }
 0x1ec   : > { %v1247_v51 = vadd.f32 %v1245_v46, %v1239_v45  ;;  %v1163_v29 = vadd.f32 %v1162_v10, %v1161_v54 }
 0x1ed   : > { %v1248_v55 = vmul.f32 %v1246_v49, %v2259_v62  ;;  %v1275_v56 = vmul.f32 %v1246_v49, %v2233_v36  ;;  %v1228_v59 = vrot.slane %v1227_v50, 4  ;;  %v1207_v15 = vrot.slane %v1206_v58, 2 }
 0x1ee   : > { %v1249_v60 = vmul.f32 %v1247_v51, %v2261_v63  ;;  %v1276_v61 = vmul.f32 %v1247_v51, %v2235_v37  ;;  %v1164_v48 = vrot.slane %v1163_v29, 1 }
 0x1ef   : > { %v1283_v3 = vadd.f32 %v1281_v52, %v1275_v56  ;;  %v1229_v4 = vadd.f32 %v1228_v59, %v1227_v50  ;;  %v1208_v33 = vadd.f32 %v1207_v15, %v1206_v58  ;;  %v1211_v50 = vcombine.high %v2305_v2, %v2305_v2  ;;  %v1125_v59 = vld [vmem:[%s697_s21] sm:$0x1] }
 0x1f0   : > { %v1250_v5 = vadd.f32 %v1249_v60, %v1248_v55  ;;  %v1284_v6 = vadd.f32 %v1282_v57, %v1276_v61  ;;  %v1142_v52 = vadd.f32 %v1141_v24, %v1140_v0  ;;  %v1234_v56 = vcombine.high %v1188_v40, %v1188_v40 }
 0x1f1   : > { %v1285_v12 = vmul.f32 %v1283_v3, %v2259_v62  ;;  %v1305_v13 = vmul.f32 %v1283_v3, %v2233_v36  ;;  %v1230_v20 = vrot.slane %v1229_v4, 2  ;;  %v1209_v41 = vrot.slane %v1208_v33, 1 }
 0x1f2   : > { %v1251_v17 = vrot.slane %v1250_v5, 4  ;;  %v1286_v19 = vmul.f32 %v1284_v6, %v2261_v63  ;;  %v1306_v21 = vmul.f32 %v1284_v6, %v2235_v37  ;;  %v1271_v58 = vrot.slane %v1264_v18, %v2282_v27 }
 0x1f3   : > { %v1313_v23 = vadd.f32 %v1311_v14, %v1305_v13  ;;  %v1231_v42 = vadd.f32 %v1230_v20, %v1229_v4  ;;  %v1165_v60 = vadd.f32 %v1164_v48, %v1163_v29  ;;  %v1190_v3 = vmul.f32 %v1188_v40, %v1125_v59 }
 0x1f4   : > { %v1252_v25 = vadd.f32 %v1251_v17, %v1250_v5  ;;  %v1287_v26 = vadd.f32 %v1286_v19, %v1285_v12  ;;  %v1314_v30 = vadd.f32 %v1312_v22, %v1306_v21  ;;  %v1210_v4 = vadd.f32 %v1209_v41, %v1208_v33 }
 0x1f5   : > { %v1315_v31 = vmul.f32 %v1313_v23, %v2259_v62  ;;  %v1328_v32 = vmul.f32 %v1313_v23, %v2233_v36  ;;  %v1232_v53 = vrot.slane %v1231_v42, 1  ;;  %v1143_v6 = vrot.slane %v1142_v52, 1 }
 0x1f6   : > { %v1253_v34 = vrot.slane %v1252_v25, 2  ;;  %v1288_v35 = vrot.slane %v1287_v26, 4  ;;  %v1316_v43 = vmul.f32 %v1314_v30, %v2261_v63  ;;  %v1329_v44 = vmul.f32 %v1314_v30, %v2235_v37 }
 0x1f7   : > { %v1336_v45 = vadd.f32 %v1334_v28, %v1328_v32  ;;  %v1294_v37 = vcombine.high %v1264_v18, %v1264_v18  ;;  %v1233_v0 = vadd.f32 %v1232_v53, %v1231_v42  ;;  %v1213_v12 = vmul.f32 %v1211_v50, %v1125_v59 }
 0x1f8   : > { %v1254_v46 = vadd.f32 %v1253_v34, %v1252_v25  ;;  %v1289_v47 = vadd.f32 %v1288_v35, %v1287_v26  ;;  %v1317_v49 = vadd.f32 %v1316_v43, %v1315_v31  ;;  %v1337_v9 = vadd.f32 %v1335_v39, %v1329_v44 }
 0x1f9   : > { %v1338_v36 = vmul.f32 %v1336_v45, %v2259_v62  ;;  %v1301_v2 = vrot.slane %v1294_v37, %v2282_v27  ;;  %v1324_v14 = vcombine.high %v1271_v58, %v1271_v58  ;;  %v1191_v15 = vadd.f32 %v1190_v3, %v1165_v60  ;;  %v1969_v60 = vld [vmem:[%s708_s24 + $0x28] sm:$0xff]  }
 0x1fa   : > { %v1290_v51 = vrot.slane %v1289_v47, 2  ;;  %v1318_v54 = vrot.slane %v1317_v49, 4  ;;  %v1339_v55 = vmul.f32 %v1337_v9, %v2261_v63  ;;  %v1255_v57 = vrot.slane %v1254_v46, 1  ;;  %v1973_v3 = vld [vmem:[%s708_s24 + $0x8] sm:$0xff]  }
 0x1fb   : > { %v1236_v63 = vmul.f32 %v1234_v56, %v1125_v59  ;;  %v1214_v20 = vadd.f32 %v1213_v12, %v1210_v4  ;;  %v1273_v21 = vmul.f32 %v1271_v58, %v1125_v59  ;;  %v1303_v22 = vmul.f32 %v1301_v2, %v1125_v59  ;;  %v1974_v4 = vld [vmem:[%s708_s24] sm:$0xff]  }
 0x1fc   : > { %v1291_v62 = vadd.f32 %v1290_v51, %v1289_v47  ;;  %v1319_v61 = vadd.f32 %v1318_v54, %v1317_v49  ;;  %v1340_v1 = vadd.f32 %v1339_v55, %v1338_v36  ;;  %v1256_v13 = vadd.f32 %v1255_v57, %v1254_v46  ;;  %v1967_v54 = vld [vmem:[%s708_s24 + $0x38] sm:$0xff]   ;;  %v1968_v55 = vld [vmem:[%s708_s24 + $0x30] sm:$0xff]   ;;  %v1800_v12 = vld [vmem:[%s703_s18] ss:$0 sm:$0xff] }
 0x1fd   : > { %v1144_v23 = vadd.f32 %v1143_v6, %v1142_v52  ;;  %v1237_v24 = vadd.f32 %v1236_v63, %v1233_v0  ;;  %v1145_v27 = vmul.f32 %v1125_v59, %v2237_v38  ;;  %v1326_v29 = vmul.f32 %v1324_v14, %v1125_v59  ;;  %1860 = vmatpush3.bf16.msra.mxu1 %v1967_v54  ;;  %v1801_v14 = vld [vmem:[%s711_s22] ss:$0 sm:$0xff] }
 0x1fe   : > { %v1292_v5 = vrot.slane %v1291_v62, 1  ;;  %v1320_v7 = vrot.slane %v1319_v61, 2  ;;  %v1341_v10 = vrot.slane %v1340_v1, 4  ;;  %v1274_v28 = vadd.f32 %v1273_v21, %v1256_v13  ;;  %1861 = vmatprep.subr.bf16.mxu1 %v2023_v11 }
 0x1ff   : > { %v1347_v30 = vcombine.high %v1301_v2, %v1301_v2  ;;  %v1352_v34 = vrot.slane %v1191_v15, 7  ;;  %v1355_v35 = vrot.slane %v1214_v20, 6  ;;  %v1146_v39 = vadd.f32 %v1145_v27, %v1144_v23 }
 0x200   : > { %v1293_v17 = vadd.f32 %v1292_v5, %v1291_v62  ;;  %v1321_v18 = vadd.f32 %v1320_v7, %v1319_v61  ;;  %v1342_v19 = vadd.f32 %v1341_v10, %v1340_v1  ;;  %v1358_v44 = vrot.slane %v1237_v24, 5  ;;  %v1970_v61 = vld [vmem:[%s708_s24 + $0x20] sm:$0xff]   ;;  %v1971_v1 = vld [vmem:[%s708_s24 + $0x18] sm:$0xff]  }
 0x201   : > { %v1361_v45 = vrot.slane %v1274_v28, 4  ;;  %v1349_v46 = vmul.f32 %v1347_v30, %v1125_v59  ;;  %v1372_v48 = vsel %vm766_vm4, %v1146_v39, %v1352_v34  ;;  %1862 = vmatpush3.bf16.msra.mxu1 %v1968_v55  ;;  %v1383_v56 = vand.u32 127, %v1038_v8  ;;  %v1972_v8 = vld [vmem:[%s708_s24 + $0x10] sm:$0xff]   ;;  %v1799_v7 = vld [vmem:[%s700_s27] ss:$0 sm:$0xff] }
 0x202   : > { %v1322_v25 = vrot.slane %v1321_v18, 1  ;;  %v1343_v26 = vrot.slane %v1342_v19, 2  ;;  %v1304_v31 = vadd.f32 %v1303_v22, %v1293_v17  ;;  %v1373_v49 = vsel %vm761_vm7, %v1372_v48, %v1355_v35  ;;  %1863 = vmatprep.subr.bf16.mxu1 %v2023_v11 }
 0x203   : > { %v1374_v36 = vsel %vm754_vm5, %v1373_v49, %v1358_v44  ;;  %vm1387_vm12 = vcmp.lt.s32.totalorder %v1383_v56, 96 }
 0x204   : > { %v1323_v32 = vadd.f32 %v1322_v25, %v1321_v18  ;;  %v1344_v33 = vadd.f32 %v1343_v26, %v1342_v19  ;;  %v1364_v47 = vrot.slane %v1304_v31, 3  ;;  %v1375_v41 = vsel %vm747_vm3, %v1374_v36, %v1361_v45 }
 0x205   : > { %1864 = vmatpush3.bf16.msra.mxu1 %v1969_v60 }
 0x206   : > { %v1327_v42 = vadd.f32 %v1326_v29, %v1323_v32  ;;  %v1345_v43 = vrot.slane %v1344_v33, 1  ;;  %v1377_v51 = vsel %vm1376_vm10, %v1375_v41, %v1364_v47  ;;  %1865 = vmatprep.subr.bf16.mxu1 %v2023_v11 }
 0x208   : > { %v1346_v40 = vadd.f32 %v1345_v43, %v1344_v33  ;;  %v1367_v38 = vrot.slane %v1327_v42, 2 }
 0x209   : > { %1866 = vmatpush3.bf16.msra.mxu1 %v1970_v61 }
 0x20a   : > { %v1350_v9 = vadd.f32 %v1349_v46, %v1346_v40  ;;  %v1378_v37 = vsel %vm736_vm1, %v1377_v51, %v1367_v38  ;;  %1867 = vmatprep.subr.bf16.mxu1 %v2023_v11 }
 0x20c   : > { %v1370_v50 = vrot.slane %v1350_v9, 1 }
 0x20d   : > { %1868 = vmatpush3.bf16.msra.mxu1 %v1971_v1 }
 0x20e   : > { %v1380_v52 = vsel %vm1379_vm11, %v1378_v37, %v1370_v50  ;;  %1869 = vmatprep.subr.bf16.mxu1 %v2023_v11 }
 0x20f   : > { %v1381_v53 = vadd.f32 %v1380_v52, %v2219_v16 }
 0x211   : > { %1384 = vadd.xlane.f32.xlu0 %v1381_v53  ;;  %1870 = vmatpush3.bf16.msra.mxu1 %v1972_v8 }
 0x212   : > { %1871 = vmatprep.subr.bf16.mxu1 %v2023_v11 }
 0x215   : > { %1872 = vmatpush3.bf16.msra.mxu1 %v1973_v3 }
 0x216   : > { %1873 = vmatprep.subr.bf16.mxu1 %v2023_v11 }
 0x219   : > { %1874 = vmatpush3.bf16.msra.mxu1 %v1974_v4 }
 0x29a   : > { %v1385_v57 = vpop.xlane.xlu0 %1384 }
 0x29b   : > { %v1386_v58 = vmul.f32 0.010416667, %v1385_v57 }
 0x29d   : > { %v1388_v16 = vsub.f32 %v1381_v53, %v1386_v58 }
 0x29f   : > { %v1389_v62 = vsel %vm1387_vm12, %v1388_v16, 0.0 }
 0x2a0   : > { %v1390_v59 = vmul.f32 %v1389_v62, %v1389_v62 }
 0x2a2   : > { %1391 = vadd.xlane.f32.xlu1 %v1390_v59 }
 0x32b   : > { %v1392_v5 = vpop.xlane.xlu1 %1391 }
 0x32c   : > { %v1393_v2 = vmul.f32 0.010416667, %v1392_v5 }
 0x32e   : > { %v1394_v6 = vadd.f32 1e-05, %v1393_v2 }
 0x330   : > { %1979 = vrsqrt.f32 %v1394_v6 }
 0x33d   : > { %v1980_v0 = vpop.eup %1979 }
 0x33e   : > { %v1396_v10 = vmul.f32 %v1980_v0, %v1389_v62 }
 0x340   : > { %v1404_v11 = vmul.f32 %v1799_v7, %v1396_v10 }
 0x342   : > { %v1412_v63 = vadd.f32 %v1800_v12, %v1404_v11 }
 0x344   : > { %v1413_v13 = vpack.c.bf16 %v1412_v63, %v1412_v63 }
 0x346   : > { %1876 = vmatmul.mubr.bf16.vlgmr.msra.gmra.mxu1 %v1413_v13 }
 0x406   : > { %v1519_v15 = vpop.f32.mrf.mxu1 }
 0x407   : > { %v1520_v17 = vadd.f32 %v1801_v14, %v1519_v15 }
 0x408   : > { %v1877_v18 = vpop.f32.mrf.mxu1 }
 0x409   : > { %v1525_v19 = vpack.c.bf16 %v1520_v17, %v1520_v17 }
 0x40a   : > { %v1522_v20 = vpop.f32.mrf.mxu1 }
 0x40b   : > { %1526 = vst [vmem:[%s719_s25] sm:$0xf] %v1525_v19 }
 0x40c   : > { %v1878_v21 = vpop.f32.mrf.mxu1 }
 0x40d PF: > { %s24_s17 = sadd.s32 1, %s2019_s17   ;;  %s2401_s30 = sld [smem:[#allocation2_spill]] }
 0x40e   : > { %p21_p7 = scmp.ge.s32.totalorder %s24_s17, 6   ;;  %s2402_s26 = sld [smem:[#allocation3_spill]] }
 0x40f   : > { %s2403_s16 = sld [smem:[#allocation4_spill]]  ;;  %s2404_s29 = smov %s2011_s15 }
 0x410   :  { %23 = sbr.rel (!%p21_p7) target bundleno = 3 (0x3), region = 145 }
 0x414   : > { %s2405_s15 = smov %s2402_s26 }

</bundles_post_ra>
